<compile_context>
chip_gen: v5e
topology: v5e:2x2
jax: 0.10.0
libtpu: 0.0.40
codegen_flags: <defaults>
</compile_context>

<pallas_src>
import jax
import jax.numpy as jnp
from jax.experimental import pallas as pl
from jax.experimental.pallas import tpu as pltpu

_LANES = 128            # vreg lane width
_MAX_TILE_ROWS = 8192   # 8192 x 128 x 4 B = 4 MiB per output buffer (x2 buffered = 8 MiB)
_SMALL_N_THRESHOLD = 65536   # output < 256 KiB -> fused XLA broadcast beats a pallas_call


def _round_up(a: int, b: int) -> int:
    return ((a + b - 1) // b) * b


def _single_variance_kernel(scale_ref, out_ref):
    # scale_ref: (1,) f32 in SMEM holding exp(variance * 10) (pre-computed in wrapper).
    # out_ref:   (tile_rows, 128) f32 in VMEM.  Pure splat + unmasked full-lane stores.
    out_ref[...] = jnp.full(out_ref.shape, scale_ref[0], out_ref.dtype)


def _pick_tile_rows(rows_needed: int) -> int:
    """Pick a tile height: ~half the rows (>=2 grid steps for megacore), capped at 4 MiB,
    preferring a tile that divides rows_needed exactly (no padding, no post-slice)."""
    target = min(_MAX_TILE_ROWS, max(8, _round_up(-(-rows_needed // 2), 8)))
    if rows_needed % 8 == 0:
        m = rows_needed // 8
        for d in range(min(target // 8, m), 0, -1):
            if m % d == 0:
                return 8 * d
    return target


def single_variance_forward(x, variance):
    """Pallas equivalent of SingleVarianceNetwork.forward.

    Args:
      x: any array whose leading dim is the batch size N (only x.shape[0] is used;
         x is never passed to / read by the kernel).
      variance: scalar parameter (float32).
    Returns:
      (N, 1) float32 array filled with exp(variance * 10).
    """
    n = int(x.shape[0])
    scale = jnp.exp(jnp.asarray(variance, jnp.float32) * jnp.float32(10.0))

    if n == 0:
        return jnp.zeros((0, 1), jnp.float32)

    if n < _SMALL_N_THRESHOLD:
        # Launch-overhead dominated regime: a fused broadcast is strictly cheaper
        # than any pallas_call on every TPU generation.
        return jnp.full((n, 1), scale, jnp.float32)

    rows_needed = -(-n // _LANES)                       # ceil(n / 128)
    tile_rows = _pick_tile_rows(rows_needed)
    rows_padded = _round_up(rows_needed, tile_rows)
    grid = (rows_padded // tile_rows,)

    slab = pl.pallas_call(
        _single_variance_kernel,
        out_shape=jax.ShapeDtypeStruct((rows_padded, _LANES), jnp.float32),
        grid=grid,
        in_specs=[pl.BlockSpec(memory_space=pltpu.SMEM)],       # scalar, untiled
        out_specs=pl.BlockSpec((tile_rows, _LANES), lambda i: (i, 0)),
        compiler_params=pltpu.CompilerParams(
            dimension_semantics=("parallel",)),
        cost_estimate=pl.CostEstimate(
            flops=0, transcendentals=0,
            bytes_accessed=rows_padded * _LANES * 4 + 4),
    )(scale.reshape(1))

    if n % _LANES == 0 and rows_padded == rows_needed:
        # Hot case: no padding -> pure layout reshape, zero extra HBM traffic.
        return slab.reshape(n, 1)
    # Ragged N: drop the padded tail.
    return slab.reshape(-1)[:n].reshape(n, 1)


if __name__ == "__main__":
    key = jax.random.PRNGKey(0)
    # Small input consistent with typical usage: batch of 2, 4x16x16 "features".
    x = jax.random.normal(key, (2, 4, 16, 16), dtype=jnp.float32)

    # Deterministic parameter init (matches __init__(init_val)).
    init_val = 0.3
    variance = jnp.float32(init_val)
    ref_val = jnp.exp(variance * 10.0)

    # 1) Small-N fast path (matches the module's typical tiny call sites).
    out = jax.block_until_ready(single_variance_forward(x, variance))
    ref = jnp.ones((x.shape[0], 1), jnp.float32) * ref_val
    assert out.shape == (x.shape[0], 1), out.shape
    assert jnp.allclose(out, ref, rtol=1e-6, atol=1e-6)

    # 2) Pallas path, exact case: N multiple of 128, no padding -> pure reshape,
    #    2-step "parallel" grid (megacore split on v7x).
    n_exact = 131072
    x_exact = jnp.zeros((n_exact, 3), jnp.float32)
    out_exact = jax.block_until_ready(single_variance_forward(x_exact, variance))
    assert out_exact.shape == (n_exact, 1), out_exact.shape
    assert jnp.allclose(out_exact, jnp.full((n_exact, 1), ref_val), rtol=1e-6, atol=1e-6)

    # 3) Pallas path, ragged case: padding rows sliced away in the wrapper.
    n_ragged = 65543
    x_ragged = jnp.zeros((n_ragged, 3), jnp.float32)
    out_ragged = jax.block_until_ready(single_variance_forward(x_ragged, variance))
    assert out_ragged.shape == (n_ragged, 1), out_ragged.shape
    assert jnp.allclose(out_ragged, jnp.full((n_ragged, 1), ref_val), rtol=1e-6, atol=1e-6)

    print("KERNEL_OK")
</pallas_src>

<mosaic_0001>
module attributes {stable_mosaic.version = 11 : i64} {
  func.func @_single_variance_kernel(%arg0: i32, %arg1: memref<1xf32, #tpu.memory_space<smem>>, %arg2: memref<512x128xf32, #tpu.memory_space<vmem>>) attributes {dimension_semantics = [#tpu.dimension_semantics<parallel>], iteration_bounds = array<i64: 2>, scalar_prefetch = 0 : i64, scratch_operands = 0 : i64, tpu.core_type = #tpu.core_type<tc>, window_params = [{transform_indices = @transform_0, window_bounds = array<i64: 1>}, {transform_indices = @transform_1, window_bounds = array<i64: 512, 128>}]} {
    %c0 = arith.constant 0 : index
    %0 = memref.load %arg1[%c0] : memref<1xf32, #tpu.memory_space<smem>>
    %1 = vector.broadcast %0 : f32 to vector<512x128xf32>
    %c0_0 = arith.constant 0 : index
    %c0_1 = arith.constant 0 : index
    %2 = vector.load %arg2[%c0_0, %c0_1] : memref<512x128xf32, #tpu.memory_space<vmem>>, vector<512x128xf32>
    tpu.vector_store %arg2[%c0_0, %c0_1], %1 {strides = array<i32>} : memref<512x128xf32, #tpu.memory_space<vmem>>, vector<512x128xf32>,
    return
  }
  func.func @transform_0(%arg0: i32) -> i32 {
    %c0_i32 = arith.constant 0 : i32
    %c0_i32_0 = arith.constant 0 : i32
    return %c0_i32 : i32
  }
  func.func @transform_1(%arg0: i32) -> (i32, i32) {
    %c0_i32 = arith.constant 0 : i32
    %c0_i32_0 = arith.constant 0 : i32
    return %arg0, %c0_i32 : i32, i32
  }
}

</mosaic_0001>

<bundles_post_ra>
// kernel: tpu_custom_call.1
= control target key start
LH: loop header
LB: loop body
LE: loop exit
PB: predicated region body
PF: predicated region fallthrough
CT: control target
= control target key end

     0   :  { %s579_s0 = inlined_call_operand.<no memory space> [shape: f32[1], index: 0, kind: input, shape index: {}]   ;;  %s580_s1 = inlined_call_operand.hbm [shape: f32[1024,128], index: 1, kind: output, shape index: {}]  }
   0x1   :  { %6 = sst [smem:[#allocation2]] %s579_s0 }
   0x2   :  { %7 = vsyncpa [#allocation4], 0 }
   0x3   :  { %9 = vsyncpa [#allocation4 + $0x1], 0  ;;  %s359_s8 = smov 0   ;;  %s361_s9 = smov 0  }
   0x4   :  { %s363_s10 = smov 0   ;;  %s365_s11 = smov 0  }
   0x5 LB: > { %s228_s0 = sadd.s32 4294967295, %s342_s11   ;;  %s229_s12 = sadd.s32 4294967294, %s342_s11   ;;  %s342_s11 = sphi %s365_s11, %s586_s11   ;;  %s338_s10 = sphi %s363_s10, %s585_s10   ;;  %s334_s9 = sphi %s361_s9, %s584_s9   ;;  %s330_s8 = sphi %s359_s8, %s583_s8  }
   0x6   : > { %s382_s13 = sadd.s32 1, %s342_s11   ;;  %s43_s14 = sadd.s32 1, %s338_s10 }
   0x7   : > { %s40_s15 = ssub.s32 %s342_s11, %s382_s13  ;;  %p53_p0 = scmp.ne.s32.totalorder %s338_s10, %s334_s9 }
   0x8   : > { %p41_p1 = scmp.eq.s32.totalorder %s40_s15, 0  ;;  %p54_p2 = scmp.eq.s32.totalorder %s228_s0, 1 }
   0x9   : > { %p59_p3 = scmp.ne.s32.totalorder %s334_s9, %s330_s8  ;;  %p60_p4 = scmp.eq.s32.totalorder %s229_s12, 1 }
   0xa   : > { %s394_s16 = scalar_select %p41_p1, %s338_s10, %s43_s14  }
   0xb   : > { %p396_p5 = por %p54_p2, %p53_p0  ;;  %p400_p6 = por %p60_p4, %p59_p3 }
   0xc   : > { %p231_p7 = scmp.ge.s32.totalorder %s342_s11, 1  ;;  %p81_p8 = scmp.lt.s32.totalorder %s342_s11, 3 }
   0xe   : > { %p82_p9 = pnand %p231_p7, %p81_p8 }
   0xf   : > { %s93_s19 = sand.u32 (!%p82_p9), 1, %s334_s9   ;;  %s97_s20 = sld [smem:[#allocation2]] (!%p82_p9) }
  0x10   : > { %85 = sbr.rel (%p82_p9) target bundleno = 89 (0x59), region = 24  ;;  %s232_s21 = sshll.u32 (!%p82_p9), %s93_s19, 9 }
  0x11   : > { %s411_s22 = scalar_lea.vmem (!%p82_p9), [#allocation3], %s232_s21  ;;  %s238_s23 = sshll.u32 (!%p82_p9), %s228_s0, 9 }
  0x12   : > { %s175_s26 = scalar_lea.hbm (!%p82_p9), %s580_s1, %s238_s23  ;;  %s176_s27 = sshll.u32 (!%p82_p9), %s411_s22, 4  ;;  %s177_s27 = int_to_ptr.vmem [resolvable:$true] %s176_s27 }
  0x13   : > { %s535_s28 = sshll.u32 (!%p82_p9), %s175_s26, 4  ;;  %s164_s29 = scalar_lea.sflag (!%p82_p9), [#allocation4], %s93_s19  ;;  %s179_s28 = int_to_ptr.hbm [resolvable:$true] %s535_s28 }
  0x14   : > { %s294_s30 = sshra.s32 (!%p82_p9), %s179_s28, 4  ;;  %s300_s5 = scalar_lea.hbm (!%p82_p9), %s580_s1, 1024  ;;  %s295_s30 = int_to_ptr.hbm [resolvable:$true] %s294_s30 }
  0x15   : > { %v409_v0 = vstv %s97_s20  ;;  %s296_s2 = scalar_lea.hbm %s295_s30, 512  ;;  %p301_p13 = scmp.lt.s32.totalorder %s295_s30, %s580_s1 }
  0x16   : > { %99 = vst [vmem:[%s411_s22] sm:$0xff] %v409_v0  ;;  %p297_p10 = scmp.ne.s32.totalorder %s295_s30, %s296_s2  ;;  %p302_p0 = scmp.lt.s32.totalorder %s300_s5, %s296_s2 }
  0x17   : > { %100 = vst [vmem:[%s411_s22 + $0x8] sm:$0xff] %v409_v0 }
  0x18   : > { %101 = vst [vmem:[%s411_s22 + $0x10] sm:$0xff] %v409_v0  ;;  %p298_p11 = pnand %p297_p10, %p396_p5  ;;  %p303_p1 = por %p302_p0, %p301_p13 }
  0x19   : > { %102 = vst [vmem:[%s411_s22 + $0x18] sm:$0xff] %v409_v0 }
  0x1a   : > { %103 = vst [vmem:[%s411_s22 + $0x20] sm:$0xff] %v409_v0  ;;  %p299_p12 = pneg %p298_p11 }
  0x1b   : > { %104 = vst [vmem:[%s411_s22 + $0x28] sm:$0xff] %v409_v0 }
  0x1c   : > { %105 = vst [vmem:[%s411_s22 + $0x30] sm:$0xff] %v409_v0  ;;  %p304_p2 = pnand %p303_p1, %p299_p12 }
  0x1d   : > { %106 = vst [vmem:[%s411_s22 + $0x38] sm:$0xff] %v409_v0 }
  0x1e   : > { %107 = vst [vmem:[%s411_s22 + $0x40] sm:$0xff] %v409_v0 }
  0x1f   : > { %108 = vst [vmem:[%s411_s22 + $0x48] sm:$0xff] %v409_v0 }
  0x20   : > { %109 = vst [vmem:[%s411_s22 + $0x50] sm:$0xff] %v409_v0 }
  0x21   : > { %110 = vst [vmem:[%s411_s22 + $0x58] sm:$0xff] %v409_v0 }
  0x22   : > { %111 = vst [vmem:[%s411_s22 + $0x60] sm:$0xff] %v409_v0 }
  0x23   : > { %112 = vst [vmem:[%s411_s22 + $0x68] sm:$0xff] %v409_v0 }
  0x24   : > { %113 = vst [vmem:[%s411_s22 + $0x70] sm:$0xff] %v409_v0 }
  0x25   : > { %114 = vst [vmem:[%s411_s22 + $0x78] sm:$0xff] %v409_v0 }
  0x26   : > { %115 = vst [vmem:[%s411_s22 + $0x80] sm:$0xff] %v409_v0 }
  0x27   : > { %116 = vst [vmem:[%s411_s22 + $0x88] sm:$0xff] %v409_v0 }
  0x28   : > { %117 = vst [vmem:[%s411_s22 + $0x90] sm:$0xff] %v409_v0 }
  0x29   : > { %118 = vst [vmem:[%s411_s22 + $0x98] sm:$0xff] %v409_v0 }
  0x2a   : > { %119 = vst [vmem:[%s411_s22 + $0xa0] sm:$0xff] %v409_v0 }
  0x2b   : > { %120 = vst [vmem:[%s411_s22 + $0xa8] sm:$0xff] %v409_v0 }
  0x2c   : > { %121 = vst [vmem:[%s411_s22 + $0xb0] sm:$0xff] %v409_v0 }
  0x2d   : > { %122 = vst [vmem:[%s411_s22 + $0xb8] sm:$0xff] %v409_v0 }
  0x2e   : > { %123 = vst [vmem:[%s411_s22 + $0xc0] sm:$0xff] %v409_v0 }
  0x2f   : > { %124 = vst [vmem:[%s411_s22 + $0xc8] sm:$0xff] %v409_v0 }
  0x30   : > { %125 = vst [vmem:[%s411_s22 + $0xd0] sm:$0xff] %v409_v0 }
  0x31   : > { %126 = vst [vmem:[%s411_s22 + $0xd8] sm:$0xff] %v409_v0 }
  0x32   : > { %127 = vst [vmem:[%s411_s22 + $0xe0] sm:$0xff] %v409_v0 }
  0x33   : > { %128 = vst [vmem:[%s411_s22 + $0xe8] sm:$0xff] %v409_v0 }
  0x34   : > { %129 = vst [vmem:[%s411_s22 + $0xf0] sm:$0xff] %v409_v0 }
  0x35   : > { %130 = vst [vmem:[%s411_s22 + $0xf8] sm:$0xff] %v409_v0 }
  0x36   : > { %131 = vst [vmem:[%s411_s22 + $0x100] sm:$0xff] %v409_v0 }
  0x37   : > { %132 = vst [vmem:[%s411_s22 + $0x108] sm:$0xff] %v409_v0 }
  0x38   : > { %133 = vst [vmem:[%s411_s22 + $0x110] sm:$0xff] %v409_v0 }
  0x39   : > { %134 = vst [vmem:[%s411_s22 + $0x118] sm:$0xff] %v409_v0 }
  0x3a   : > { %135 = vst [vmem:[%s411_s22 + $0x120] sm:$0xff] %v409_v0 }
  0x3b   : > { %136 = vst [vmem:[%s411_s22 + $0x128] sm:$0xff] %v409_v0 }
  0x3c   : > { %137 = vst [vmem:[%s411_s22 + $0x130] sm:$0xff] %v409_v0 }
  0x3d   : > { %138 = vst [vmem:[%s411_s22 + $0x138] sm:$0xff] %v409_v0 }
  0x3e   : > { %139 = vst [vmem:[%s411_s22 + $0x140] sm:$0xff] %v409_v0 }
  0x3f   : > { %140 = vst [vmem:[%s411_s22 + $0x148] sm:$0xff] %v409_v0 }
  0x40   : > { %141 = vst [vmem:[%s411_s22 + $0x150] sm:$0xff] %v409_v0 }
  0x41   : > { %142 = vst [vmem:[%s411_s22 + $0x158] sm:$0xff] %v409_v0 }
  0x42   : > { %143 = vst [vmem:[%s411_s22 + $0x160] sm:$0xff] %v409_v0 }
  0x43   : > { %144 = vst [vmem:[%s411_s22 + $0x168] sm:$0xff] %v409_v0 }
  0x44   : > { %145 = vst [vmem:[%s411_s22 + $0x170] sm:$0xff] %v409_v0 }
  0x45   : > { %146 = vst [vmem:[%s411_s22 + $0x178] sm:$0xff] %v409_v0 }
  0x46   : > { %147 = vst [vmem:[%s411_s22 + $0x180] sm:$0xff] %v409_v0 }
  0x47   : > { %148 = vst [vmem:[%s411_s22 + $0x188] sm:$0xff] %v409_v0 }
  0x48   : > { %149 = vst [vmem:[%s411_s22 + $0x190] sm:$0xff] %v409_v0 }
  0x49   : > { %150 = vst [vmem:[%s411_s22 + $0x198] sm:$0xff] %v409_v0 }
  0x4a   : > { %151 = vst [vmem:[%s411_s22 + $0x1a0] sm:$0xff] %v409_v0 }
  0x4b   : > { %152 = vst [vmem:[%s411_s22 + $0x1a8] sm:$0xff] %v409_v0 }
  0x4c   : > { %153 = vst [vmem:[%s411_s22 + $0x1b0] sm:$0xff] %v409_v0 }
  0x4d   : > { %154 = vst [vmem:[%s411_s22 + $0x1b8] sm:$0xff] %v409_v0 }
  0x4e   : > { %155 = vst [vmem:[%s411_s22 + $0x1c0] sm:$0xff] %v409_v0 }
  0x4f   : > { %156 = vst [vmem:[%s411_s22 + $0x1c8] sm:$0xff] %v409_v0 }
  0x50   : > { %157 = vst [vmem:[%s411_s22 + $0x1d0] sm:$0xff] %v409_v0 }
  0x51   : > { %158 = vst [vmem:[%s411_s22 + $0x1d8] sm:$0xff] %v409_v0 }
  0x52   : > { %159 = vst [vmem:[%s411_s22 + $0x1e0] sm:$0xff] %v409_v0 }
  0x53   : > { %160 = vst [vmem:[%s411_s22 + $0x1e8] sm:$0xff] %v409_v0 }
  0x54   : > { %161 = vst [vmem:[%s411_s22 + $0x1f0] sm:$0xff] %v409_v0 }
  0x55   : > { %162 = vst [vmem:[%s411_s22 + $0x1f8] sm:$0xff] %v409_v0 }
  0x56   : > { %307 = shalt.err (!%p304_p2)
}
  0x57   : > { %s344_s0 = smov 128   ;;  %s345_s12 = smov 8  }
  0x58   : > { %239 = dma.vmem_to_hbm [thread:$0]  (%p396_p5), %s177_s27, 8192, %s179_s28, %s164_s29, %s344_s0, %s344_s0, %s345_s12  }
  0x59 PF: > { %p245_p3 = scmp.ge.s32.totalorder %s342_s11, 2  ;;  %s193_s14 = sand.u32 1, %s330_s8  }
  0x5a   : > { %s194_s15 = scalar_lea.sflag [#allocation4], %s193_s14 }
  0x5b   : > { %p242_p4 = pnand %p245_p3, %p400_p6 }
  0x5d   : > { %p243_p7 = pneg %p242_p4 }
  0x5f   : > { %325 = dma.done.wait (%p243_p7), %s194_s15, 8192  }
  0x60   : > { %327 = vsyncadd (%p243_p7), %s194_s15, 4294959104  ;;  %p12_p8 = scmp.ge.s32.totalorder %s382_s13, 4   ;;  %s583_s8 = smov %s334_s9 }
  0x61   : > { %s584_s9 = smov %s338_s10  ;;  %s585_s10 = smov %s394_s16 }
  0x62   : > { %s586_s11 = smov %s382_s13  ;;  %14 = sbr.rel (!%p12_p8) target bundleno = 5 (0x5), region = 56 }
  0x67   :  { %200 = vsyncpa [#allocation4], 1 }
  0x68   :  { %202 = vsyncpa [#allocation4 + $0x1], 1 }

</bundles_post_ra>
